<compile_context>
chip_gen: v6e
topology: v6e:2x2x1
jax: 0.10.0
libtpu: 0.0.40
codegen_flags: <defaults>
</compile_context>

<pallas_src>
import math

import jax
import jax.numpy as jnp
from jax import lax
from jax.experimental import pallas as pl
from jax.experimental.pallas import tpu as pltpu


def _round_up(v, m):
    return ((v + m - 1) // m) * m


def _nt_dot(x_tile, w_tile):
    # x_tile: (tm, tk), w_tile: (tn, tk) -> (tm, tn); contract last dims of
    # both (i.e. x @ w.T) so the weight never needs a host-side transpose.
    return lax.dot_general(
        x_tile, w_tile,
        dimension_numbers=(((1,), (1,)), ((), ())),
        preferred_element_type=jnp.float32,
    )


def linear_kernel_f32_out(x_ref, w_ref, b_ref, o_ref):
    """f32 output: accumulate directly into the resident output block."""
    k = pl.program_id(2)

    @pl.when(k == 0)
    def _():
        # Bias added exactly once, as the accumulator's initial value.
        o_ref[...] = jnp.broadcast_to(b_ref[...].astype(o_ref.dtype),
                                      o_ref.shape)

    o_ref[...] += _nt_dot(x_ref[...], w_ref[...])


def linear_kernel_scratch(x_ref, w_ref, b_ref, o_ref, acc_ref):
    """Narrow output dtype: f32 VMEM accumulator, single cast at finalize."""
    k = pl.program_id(2)

    @pl.when(k == 0)
    def _():
        acc_ref[...] = jnp.broadcast_to(b_ref[...].astype(jnp.float32),
                                        acc_ref.shape)

    acc_ref[...] += _nt_dot(x_ref[...], w_ref[...])

    @pl.when(k == pl.num_programs(2) - 1)
    def _():
        o_ref[...] = acc_ref[...].astype(o_ref.dtype)


def linear_forward(x, w, b, *, tm=512, tn=512, tk=1024,
                   compute_dtype=jnp.bfloat16):
    """y = x @ w.T + b via a tiled Pallas matmul kernel.

    x: (N, dim_in)                -- batch of inputs
    w: (dim_out, dim_in)          -- PyTorch-style weight (applied transposed)
    b: (1, dim_out) or (dim_out,) -- bias, broadcast over the batch

    Pass w/b already stored in `compute_dtype` (e.g. bf16 at init) to avoid a
    per-call cast of the weight matrix.
    # TODO(synk): for inference, store fp8 weights on v7x / int8 on v5e-v6e
    # (bf16 activations, f32 accumulation) to further cut weight HBM traffic.
    """
    N, dim_in = x.shape
    dim_out, din_w = w.shape
    assert din_w == dim_in

    cd = jnp.dtype(compute_dtype)
    out_dtype = x.dtype
    b2 = b.reshape(1, dim_out)

    # Dtype-aware hardware minimums: (8,128) f32, (16,128) bf16, (32,128) 8-bit.
    if cd.itemsize == 4:
        sub_min = 8
    elif cd.itemsize == 2:
        sub_min = 16
    else:
        sub_min = 32
    lane_min = 128

    # Clamp tiles to the (padded) problem while keeping hardware alignment.
    tm = min(tm, _round_up(N, sub_min))
    tn = min(tn, _round_up(dim_out, lane_min))   # lane of out, sublane of w tile
    tk = min(tk, _round_up(dim_in, lane_min))

    Mp = _round_up(N, tm)
    Np = _round_up(dim_out, tn)
    Kp = _round_up(dim_in, tk)

    # v7x megacore: ensure at least one "parallel" axis has >= 2 blocks so both
    # TensorCores get work (no-op on single-TC v5e/v6e).
    if Mp // tm == 1 and Np // tn == 1:
        if Np >= 2 * lane_min:
            tn = _round_up(Np // 2, lane_min)
            Np = _round_up(dim_out, tn)
        elif Mp >= 2 * sub_min:
            tm = _round_up(Mp // 2, sub_min)
            Mp = _round_up(N, tm)

    # Cast operands to the MXU compute dtype only if not already stored that way.
    xc = x if x.dtype == cd else x.astype(cd)
    wc = w if w.dtype == cd else w.astype(cd)

    # Zero-pad to tile multiples (zeros contribute nothing to the dot product).
    xp = xc if (Mp, Kp) == (N, dim_in) else jnp.pad(
        xc, ((0, Mp - N), (0, Kp - dim_in)))
    wp = wc if (Np, Kp) == (dim_out, dim_in) else jnp.pad(
        wc, ((0, Np - dim_out), (0, Kp - dim_in)))
    bp = b2 if Np == dim_out else jnp.pad(b2, ((0, 0), (0, Np - dim_out)))

    grid = (Mp // tm, Np // tn, Kp // tk)

    if jnp.dtype(out_dtype) == jnp.dtype(jnp.float32):
        kernel = linear_kernel_f32_out
        scratch_shapes = []
        acc_bytes = 0
    else:
        kernel = linear_kernel_scratch
        scratch_shapes = [pltpu.VMEM((tm, tn), jnp.float32)]
        acc_bytes = tm * tn * 4

    # VMEM budget: double-buffered x/w/out tiles + accumulator, 2x headroom,
    # floor 32 MiB, cap 48 MiB (v7x TensorCore has only 64 MiB physical).
    out_bytes = jnp.dtype(out_dtype).itemsize
    tile_bytes = (2 * (tm * tk * cd.itemsize + tn * tk * cd.itemsize
                       + tm * tn * out_bytes) + acc_bytes)
    vmem_limit = int(min(48 * 1024 * 1024,
                         max(2 * tile_bytes, 32 * 1024 * 1024)))

    out = pl.pallas_call(
        kernel,
        out_shape=jax.ShapeDtypeStruct((Mp, Np), out_dtype),
        grid_spec=pltpu.PrefetchScalarGridSpec(
            num_scalar_prefetch=0,
            grid=grid,
            in_specs=[
                pl.BlockSpec((tm, tk), lambda i, j, k: (i, k)),   # x tile
                pl.BlockSpec((tn, tk), lambda i, j, k: (j, k)),   # w tile (NT)
                pl.BlockSpec((1, tn), lambda i, j, k: (0, j)),    # bias tile
            ],
            out_specs=pl.BlockSpec((tm, tn), lambda i, j, k: (i, j)),
            scratch_shapes=scratch_shapes,
        ),
        compiler_params=pltpu.CompilerParams(
            dimension_semantics=("parallel", "parallel", "arbitrary"),
            vmem_limit_bytes=vmem_limit,
        ),
    )(xp, wp, bp)

    if (Mp, Np) != (N, dim_out):
        out = out[:N, :dim_out]
    return out


def xavier_uniform(key, fan_in, fan_out, shape):
    """Deterministic Xavier / Glorot uniform init."""
    limit = math.sqrt(6.0 / (fan_in + fan_out))
    return jax.random.uniform(key, shape, dtype=jnp.float32,
                              minval=-limit, maxval=limit)


def _ref_matmul_f32(x_f32, w_f32, b_f32):
    """Exact-order f32 reference (HIGHEST precision)."""
    return lax.dot_general(
        x_f32, w_f32,
        dimension_numbers=(((1,), (1,)), ((), ())),
        precision=lax.Precision.HIGHEST,
        preferred_element_type=jnp.float32,
    ) + b_f32


if __name__ == "__main__":
    key = jax.random.PRNGKey(0)

    # --- Case 1: small shapes implied by the module (f32 activations,
    #     bf16-stored weights -> no per-call weight cast). ---
    N, dim_in, dim_out = 8, 32, 16
    kx, kw, kb, k2, k3 = jax.random.split(key, 5)

    x = jax.random.normal(kx, (N, dim_in), dtype=jnp.float32)
    w = xavier_uniform(kw, dim_in, dim_out, (dim_out, dim_in))
    b = xavier_uniform(kb, dim_out, 1, (1, dim_out))
    w_bf16 = w.astype(jnp.bfloat16)     # "stored in bf16 at init"

    y = linear_forward(x, w_bf16, b)
    jax.block_until_ready(y)
    assert y.shape == (N, dim_out)

    y_ref = _ref_matmul_f32(x.astype(jnp.bfloat16).astype(jnp.float32),
                            w_bf16.astype(jnp.float32), b)
    assert jnp.allclose(y, y_ref, atol=1e-4, rtol=1e-4)
    # Sanity vs. full-f32 math (bf16 operand rounding only).
    assert jnp.allclose(y, x @ w.T + b, atol=5e-2, rtol=5e-2)

    # --- Case 2: exercises the multi-tile (2,2,2) grid, the K-axis
    #     accumulation into the resident f32 output block, and bias-once. ---
    N2, din2, dout2 = 32, 256, 256
    kx2, kw2, kb2 = jax.random.split(k2, 3)
    x2 = jax.random.normal(kx2, (N2, din2), dtype=jnp.float32)
    w2 = xavier_uniform(kw2, din2, dout2, (dout2, din2)).astype(jnp.bfloat16)
    b2 = xavier_uniform(kb2, dout2, 1, (1, dout2))

    y2 = linear_forward(x2, w2, b2, tm=16, tn=128, tk=128)  # grid = (2, 2, 2)
    jax.block_until_ready(y2)
    assert y2.shape == (N2, dout2)

    y2_ref = _ref_matmul_f32(x2.astype(jnp.bfloat16).astype(jnp.float32),
                             w2.astype(jnp.float32), b2)
    assert jnp.allclose(y2, y2_ref, atol=1e-3, rtol=1e-3)

    # --- Case 3: fully-bf16 inputs/outputs -> exercises the f32 VMEM scratch
    #     accumulator path with a single cast at finalize. ---
    N3, din3, dout3 = 16, 128, 128
    kx3, kw3, kb3 = jax.random.split(k3, 3)
    x3 = jax.random.normal(kx3, (N3, din3), dtype=jnp.float32).astype(jnp.bfloat16)
    w3 = xavier_uniform(kw3, din3, dout3, (dout3, din3)).astype(jnp.bfloat16)
    b3 = xavier_uniform(kb3, dout3, 1, (1, dout3)).astype(jnp.bfloat16)

    y3 = linear_forward(x3, w3, b3)
    jax.block_until_ready(y3)
    assert y3.shape == (N3, dout3) and y3.dtype == jnp.bfloat16

    y3_ref = _ref_matmul_f32(x3.astype(jnp.float32), w3.astype(jnp.float32),
                             b3.astype(jnp.float32))
    assert jnp.allclose(y3.astype(jnp.float32), y3_ref, atol=2e-2, rtol=2e-2)

    print("KERNEL_OK")
</pallas_src>

<mosaic_0001>
module attributes {stable_mosaic.version = 11 : i64} {
  func.func @linear_kernel_f32_out(%arg0: i32, %arg1: i32, %arg2: i32, %arg3: memref<16x128xbf16, #tpu.memory_space<vmem>>, %arg4: memref<128x128xbf16, #tpu.memory_space<vmem>>, %arg5: memref<1x128xf32, #tpu.memory_space<vmem>>, %arg6: memref<16x128xf32, #tpu.memory_space<vmem>>) attributes {dimension_semantics = [#tpu.dimension_semantics<parallel>, #tpu.dimension_semantics<parallel>, #tpu.dimension_semantics<arbitrary>], iteration_bounds = array<i64: 1, 1, 1>, scalar_prefetch = 0 : i64, scratch_operands = 0 : i64, tpu.core_type = #tpu.core_type<tc>, window_params = [{transform_indices = @transform_0, window_bounds = array<i64: 16, 128>}, {transform_indices = @transform_1, window_bounds = array<i64: 128, 128>}, {transform_indices = @transform_2, window_bounds = array<i64: 1, 128>}, {transform_indices = @transform_3, window_bounds = array<i64: 16, 128>}]} {
    %c0_i32 = arith.constant 0 : i32
    %0 = arith.cmpi eq, %arg2, %c0_i32 : i32
    %1 = arith.extui %0 : i1 to i32
    %c0_i32_0 = arith.constant 0 : i32
    %2 = arith.cmpi ne, %1, %c0_i32_0 : i32
    scf.if %2 {
      %c0_8 = arith.constant 0 : index
      %c0_9 = arith.constant 0 : index
      %9 = vector.load %arg5[%c0_8, %c0_9] : memref<1x128xf32, #tpu.memory_space<vmem>>, vector<1x128xf32>
      %10 = vector.shape_cast %9 : vector<1x128xf32> to vector<1x128xf32>
      %11 = vector.broadcast %10 : vector<1x128xf32> to vector<16x128xf32>
      %c0_10 = arith.constant 0 : index
      %c0_11 = arith.constant 0 : index
      %12 = vector.load %arg6[%c0_10, %c0_11] : memref<16x128xf32, #tpu.memory_space<vmem>>, vector<16x128xf32>
      tpu.vector_store %arg6[%c0_10, %c0_11], %11 {strides = array<i32>} : memref<16x128xf32, #tpu.memory_space<vmem>>, vector<16x128xf32>,
    } else {
    }
    %c0 = arith.constant 0 : index
    %c0_1 = arith.constant 0 : index
    %3 = vector.load %arg6[%c0, %c0_1] : memref<16x128xf32, #tpu.memory_space<vmem>>, vector<16x128xf32>
    %c0_2 = arith.constant 0 : index
    %c0_3 = arith.constant 0 : index
    %4 = vector.load %arg3[%c0_2, %c0_3] : memref<16x128xbf16, #tpu.memory_space<vmem>>, vector<16x128xbf16>
    %c0_4 = arith.constant 0 : index
    %c0_5 = arith.constant 0 : index
    %5 = vector.load %arg4[%c0_4, %c0_5] : memref<128x128xbf16, #tpu.memory_space<vmem>>, vector<128x128xbf16>
    %cst = arith.constant dense<0.000000e+00> : vector<16x128xf32>
    %6 = tpu.matmul %4, %5, %cst {dimension_numbers = #tpu.dot_dimension_numbers<[1], [1], [0], [0], [0, 0, 1, 0], [], []>} : vector<16x128xbf16>, vector<128x128xbf16>, vector<16x128xf32> -> vector<16x128xf32>
    %7 = arith.addf %3, %6 : vector<16x128xf32>
    %c0_6 = arith.constant 0 : index
    %c0_7 = arith.constant 0 : index
    %8 = vector.load %arg6[%c0_6, %c0_7] : memref<16x128xf32, #tpu.memory_space<vmem>>, vector<16x128xf32>
    tpu.vector_store %arg6[%c0_6, %c0_7], %7 {strides = array<i32>} : memref<16x128xf32, #tpu.memory_space<vmem>>, vector<16x128xf32>,
    return
  }
  func.func @transform_0(%arg0: i32, %arg1: i32, %arg2: i32) -> (i32, i32) {
    %c0_i32 = arith.constant 0 : i32
    return %arg0, %arg2 : i32, i32
  }
  func.func @transform_1(%arg0: i32, %arg1: i32, %arg2: i32) -> (i32, i32) {
    %c0_i32 = arith.constant 0 : i32
    return %arg1, %arg2 : i32, i32
  }
  func.func @transform_2(%arg0: i32, %arg1: i32, %arg2: i32) -> (i32, i32) {
    %c0_i32 = arith.constant 0 : i32
    %c0_i32_0 = arith.constant 0 : i32
    return %c0_i32, %arg1 : i32, i32
  }
  func.func @transform_3(%arg0: i32, %arg1: i32, %arg2: i32) -> (i32, i32) {
    %c0_i32 = arith.constant 0 : i32
    return %arg0, %arg1 : i32, i32
  }
}

</mosaic_0001>

<bundles_post_ra>
// kernel: tpu_custom_call.1
= control target key start
LH: loop header
LB: loop body
LE: loop exit
PB: predicated region body
PF: predicated region fallthrough
CT: control target
= control target key end

     0   :  { %8 = vsyncpa [#allocation3], 0  ;;  %s358_s0 = inlined_call_operand.hbm [shape: bf16[16,128], index: 0, kind: input, shape index: {}]   ;;  %s359_s1 = inlined_call_operand.hbm [shape: bf16[128,128], index: 1, kind: input, shape index: {}]   ;;  %s360_s2 = inlined_call_operand.vmem [shape: f32[1,128], index: 2, kind: input, shape index: {}]   ;;  %s361_s3 = inlined_call_operand.hbm [shape: f32[16,128], index: 3, kind: output, shape index: {}]  }
   0x1   :  { %9 = vsyncpa [#allocation6], 0 }
   0x2   :  { %10 = vsyncpa [#allocation4], 0  ;;  %s317_s12 = smov [#allocation2]  }
   0x3   :  { %s16_s13 = sshll.u32 %s317_s12, 4  ;;  %s17_s13 = int_to_ptr.vmem [resolvable:$true] %s16_s13 }
   0x4   :  { %s259_s14 = scalar_lea.vmem %s17_s13, 128  ;;  %p264_p1 = scmp.lt.s32.totalorder %s17_s13, %s17_s13 }
   0x5   :  { %p260_p0 = scmp.ne.s32.totalorder %s17_s13, %s259_s14  ;;  %p265_p2 = scmp.lt.s32.totalorder %s259_s14, %s259_s14 }
   0x7   :  { %p266_p3 = por %p265_p2, %p264_p1 }
   0x9   :  { %p267_p4 = pnand %p266_p3, %p260_p0 }
   0xb   :  { %270 = shalt.err (!%p267_p4)
}
   0xc   :  { %s318_s15 = smov 64   ;;  %s319_s16 = smov 4  }
   0xd   :  { %22 = dma.hbm_to_vmem [thread:$0]  %s358_s0, 128, %s17_s13, [#allocation3], %s318_s15, %s318_s15, %s319_s16  }
   0xe   :  { %s320_s19 = smov [#allocation5]  }
   0xf   :  { %s28_s20 = sshll.u32 %s320_s19, 4  ;;  %s29_s20 = int_to_ptr.vmem [resolvable:$true] %s28_s20 }
  0x10   :  { %s279_s21 = scalar_lea.vmem %s29_s20, 1024  ;;  %p284_p6 = scmp.lt.s32.totalorder %s29_s20, %s29_s20 }
  0x11   :  { %p280_p5 = scmp.ne.s32.totalorder %s29_s20, %s279_s21  ;;  %p285_p7 = scmp.lt.s32.totalorder %s279_s21, %s279_s21 }
  0x13   :  { %p286_p8 = por %p285_p7, %p284_p6 }
  0x15   :  { %p287_p9 = pnand %p286_p8, %p280_p5 }
  0x17   :  { %290 = shalt.err (!%p287_p9)
}
  0x18   :  { %34 = dma.hbm_to_vmem [thread:$0]  %s359_s1, 1024, %s29_s20, [#allocation6], %s318_s15, %s318_s15, %s319_s16  }
  0x19   :  { %311 = dma.done.wait [#allocation3], 128  }
  0x1a   :  { %312 = vsyncadd [#allocation3], 4294967168 }
  0x1b   :  { %313 = dma.done.wait [#allocation6], 1024  }
  0x1c   :  { %314 = vsyncadd [#allocation6], 4294966272  ;;  %v321_v0 = vmov 0.0   ;;  %vm322_vm0 = vmmov 0   ;;  %v242_v1 = vld [vmem:[#allocation5 + $0x38] sm:$0xff]   ;;  %v243_v2 = vld [vmem:[#allocation5 + $0x30] sm:$0xff]  }
  0x1d   :  { %213 = vmatprep.subr.bf16.mxu0 %v321_v0  ;;  %229 = vmatprep.mubr.msk.bf16.mxu0 %vm322_vm0, %v321_v0  ;;  %v244_v3 = vld [vmem:[#allocation5 + $0x28] sm:$0xff]   ;;  %v245_v4 = vld [vmem:[#allocation5 + $0x20] sm:$0xff]   ;;  %v246_v5 = vld [vmem:[#allocation5 + $0x18] sm:$0xff]   ;;  %s323_s24 = smov [#allocation7]  }
  0x1e   :  { %214 = vmatpush3.bf16.xpose.msra.mxu0 %v242_v1  ;;  %v247_v6 = vld [vmem:[#allocation5 + $0x10] sm:$0xff]   ;;  %v248_v7 = vld [vmem:[#allocation5 + $0x8] sm:$0xff]   ;;  %v249_v8 = vld [vmem:[#allocation5] sm:$0xff]   ;;  %s181_s25 = sshll.u32 %s323_s24, 4  ;;  %s182_s25 = int_to_ptr.vmem [resolvable:$true] %s181_s25 }
  0x1f   :  { %215 = vmatprep.subr.bf16.mxu0 %v321_v0  ;;  %v250_v9 = vld [vmem:[#allocation2] sm:$0xff]   ;;  %s291_s26 = scalar_lea.vmem %s182_s25, 256  ;;  %p296_p11 = scmp.lt.s32.totalorder %s182_s25, %s182_s25 }
  0x20   :  { %v194_v10 = vld [vmem:[%s360_s2] ss:$0 sm:$0xff]  ;;  %p292_p10 = scmp.ne.s32.totalorder %s182_s25, %s291_s26  ;;  %p297_p12 = scmp.lt.s32.totalorder %s291_s26, %s291_s26 }
  0x22   :  { %p298_p13 = por %p297_p12, %p296_p11 }
  0x24   :  { %p299_p0 = pnand %p298_p13, %p292_p10 }
  0x26   :  { %216 = vmatpush3.bf16.xpose.msra.mxu0 %v243_v2 }
  0x27   :  { %217 = vmatprep.subr.bf16.mxu0 %v321_v0 }
  0x2e   :  { %218 = vmatpush3.bf16.xpose.msra.mxu0 %v244_v3 }
  0x2f   :  { %219 = vmatprep.subr.bf16.mxu0 %v321_v0 }
  0x36   :  { %220 = vmatpush3.bf16.xpose.msra.mxu0 %v245_v4 }
  0x37   :  { %221 = vmatprep.subr.bf16.mxu0 %v321_v0 }
  0x3e   :  { %222 = vmatpush3.bf16.xpose.msra.mxu0 %v246_v5 }
  0x3f   :  { %223 = vmatprep.subr.bf16.mxu0 %v321_v0 }
  0x46   :  { %224 = vmatpush3.bf16.xpose.msra.mxu0 %v247_v6 }
  0x47   :  { %225 = vmatprep.subr.bf16.mxu0 %v321_v0 }
  0x4e   :  { %226 = vmatpush3.bf16.xpose.msra.mxu0 %v248_v7 }
  0x4f   :  { %227 = vmatprep.subr.bf16.mxu0 %v321_v0 }
  0x56   :  { %228 = vmatpush3.bf16.xpose.msra.mxu0 %v249_v8 }
  0x5d   :  { %230 = vmatmul.mubr.bf16.vlgmr.msra.gmra.mxu0 %v250_v9 }
 0x11d   :  { %v165_v11 = vpop.f32.mrf.mxu0 }
 0x11e   :  { %v172_v12 = vadd.f32 %v194_v10, %v165_v11 }
 0x11f   :  { %v231_v13 = vpop.f32.mrf.mxu0 }
 0x120   :  { %174 = vst [vmem:[#allocation7] sm:$0xff] %v172_v12 }
 0x121   :  { %v168_v14 = vpop.f32.mrf.mxu0 }
 0x122   :  { %v173_v15 = vadd.f32 %v194_v10, %v168_v14 }
 0x123   :  { %v232_v16 = vpop.f32.mrf.mxu0 }
 0x124   :  { %175 = vst [vmem:[#allocation7 + $0x8] sm:$0xff] %v173_v15 }
 0x125   :  { %302 = shalt.err (!%p299_p0)
}
 0x126   :  { %s324_s27 = smov 128   ;;  %s325_s2 = smov 8  }
 0x127   :  { %187 = dma.vmem_to_hbm [thread:$0]  %s182_s25, 256, %s361_s3, [#allocation4], %s324_s27, %s324_s27, %s325_s2  }
 0x128   :  { %315 = dma.done.wait [#allocation4], 256  }
 0x129   :  { %316 = vsyncadd [#allocation4], 4294967040 }
 0x12a   :  { %191 = vsyncpa [#allocation3], 1 }
 0x12b   :  { %192 = vsyncpa [#allocation6], 1 }
 0x12c   :  { %193 = vsyncpa [#allocation4], 1 }

</bundles_post_ra>
